<compile_context>
chip_gen: v7x
topology: tpu7x:2x2x1
jax: 0.10.0
libtpu: 0.0.40
codegen_flags: <defaults>
</compile_context>

<pallas_src>
import functools

import jax
import jax.numpy as jnp
from jax.experimental import pallas as pl
from jax.experimental.pallas import tpu as pltpu

_LANE = 128                 # boxes per packed row
_ROW_W = 4 * _LANE          # 512 flat coords per packed row
_MAX_TR = 512               # rows per grid step -> 1 MiB per input block (f32)
_PALLAS_MIN_BOXES = 65536   # below this, fused XLA wins on fixed overhead


def _round_up(x, m):
    return ((x + m - 1) // m) * m


def _box_distance_kernel(*refs, box_distance_type, transport_lambda, has_prev):
    if has_prev:
        prop_ref, pred_ref, rmat_ref, prev_ref, out_ref = refs
    else:
        prop_ref, pred_ref, rmat_ref, out_ref = refs
        prev_ref = None

    # (TR, 512) blocks: 128 boxes per row, 4 adjacent coord lanes per box.
    diff = prop_ref[...].astype(jnp.float32) - pred_ref[...].astype(jnp.float32)

    if box_distance_type == "l1":
        d = jnp.abs(diff)
    elif box_distance_type == "l2":
        d = diff * diff
    else:
        raise ValueError(f"Unsupported box_distance_type {box_distance_type}")

    # Group-of-4-adjacent-lanes reduction on the idle MXU:
    # rmat[i, j] = 1.0 iff i // 4 == j, so (TR,512) @ (512,128) -> per-box sums.
    dist = jnp.dot(d, rmat_ref[...], preferred_element_type=jnp.float32)
    dist = dist * transport_lambda

    if has_prev:
        dist = dist + prev_ref[...].astype(jnp.float32)

    out_ref[...] = dist.astype(out_ref.dtype)


def box_distance_loss(proposal_boxes, pred_boxes, prev_transport_loss=None, *,
                      box_distance_type="l1", transport_lambda=1.0,
                      use_pallas=None):
    """Returns the updated per-box transport_loss, shape (B, N)."""
    B, N, C = proposal_boxes.shape
    assert C == 4, "boxes must have 4 coordinates"
    if box_distance_type not in ("l1", "l2"):
        raise ValueError(f"Unsupported box_distance_type {box_distance_type}")

    has_prev = prev_transport_loss is not None
    if has_prev:
        out_dtype = jnp.result_type(proposal_boxes.dtype,
                                    prev_transport_loss.dtype)
    else:
        out_dtype = proposal_boxes.dtype
    lam = float(transport_lambda)

    nb = B * N
    if use_pallas is None:
        use_pallas = nb >= _PALLAS_MIN_BOXES

    if not use_pallas:
        # One fused elementwise + tiny reduce in XLA; no pallas_call overhead.
        diff = (proposal_boxes.astype(jnp.float32)
                - pred_boxes.astype(jnp.float32))
        d = jnp.abs(diff) if box_distance_type == "l1" else diff * diff
        dist = d.sum(-1) * lam
        if has_prev:
            dist = dist + prev_transport_loss.astype(jnp.float32)
        return dist.astype(out_dtype)

    # ---- flat-slab views (pure reshapes; pad only if B*N % 128 != 0) ----
    rows = pl.cdiv(nb, _LANE)
    pad_boxes = rows * _LANE - nb

    prop_flat = proposal_boxes.reshape(-1)
    pred_flat = pred_boxes.reshape(-1)
    if pad_boxes:
        prop_flat = jnp.pad(prop_flat, (0, pad_boxes * 4))
        pred_flat = jnp.pad(pred_flat, (0, pad_boxes * 4))
    prop2d = prop_flat.reshape(rows, _ROW_W)
    pred2d = pred_flat.reshape(rows, _ROW_W)

    operands = [prop2d, pred2d]

    # Constant 0/1 reduction matrix: rmat[i, j] = (i // 4 == j).
    rmat = (jax.lax.broadcasted_iota(jnp.int32, (_ROW_W, _LANE), 0) // 4
            == jax.lax.broadcasted_iota(jnp.int32, (_ROW_W, _LANE), 1)
            ).astype(jnp.float32)
    operands.append(rmat)

    if has_prev:
        prev_flat = prev_transport_loss.reshape(-1)
        if pad_boxes:
            prev_flat = jnp.pad(prev_flat, (0, pad_boxes))
        operands.append(prev_flat.reshape(rows, _LANE))

    # ---- tile over rows: big blocks, cdiv grid, >=2 steps when possible ----
    if rows <= 8:
        tr = rows                       # full extent (satisfies layout rule)
    else:
        # Cap at _MAX_TR rows (1 MiB / input block) but keep >=2 grid steps so
        # both v7x TensorCores get work; tr must be a multiple of 8.
        tr = min(_MAX_TR, _round_up(pl.cdiv(rows, 2), 8))
    grid = (pl.cdiv(rows, tr),)

    in_specs = [
        pl.BlockSpec((tr, _ROW_W), lambda i: (i, 0)),      # proposal coords
        pl.BlockSpec((tr, _ROW_W), lambda i: (i, 0)),      # pred coords
        pl.BlockSpec((_ROW_W, _LANE), lambda i: (0, 0)),   # reduction matrix
    ]
    if has_prev:
        in_specs.append(pl.BlockSpec((tr, _LANE), lambda i: (i, 0)))

    kernel = functools.partial(
        _box_distance_kernel,
        box_distance_type=box_distance_type,
        transport_lambda=lam,
        has_prev=has_prev,
    )

    out2d = pl.pallas_call(
        kernel,
        out_shape=jax.ShapeDtypeStruct((rows, _LANE), out_dtype),
        grid=grid,
        in_specs=in_specs,
        out_specs=pl.BlockSpec((tr, _LANE), lambda i: (i, 0)),
        compiler_params=pltpu.CompilerParams(
            dimension_semantics=("parallel",)),
    )(*operands)

    # Slice off padded tail boxes (never run finiteness checks on the pad).
    if pad_boxes:
        return out2d.reshape(-1)[:nb].reshape(B, N)
    return out2d.reshape(B, N)


if __name__ == "__main__":
    key = jax.random.PRNGKey(0)
    k1, k2, k3 = jax.random.split(key, 3)

    B, N = 2, 1024  # batch of 2 images, 1024 proposal boxes each
    proposal_boxes = jax.random.uniform(k1, (B, N, 4), dtype=jnp.float32) * 100.0
    pred_boxes = jax.random.uniform(k2, (B, N, 4), dtype=jnp.float32) * 100.0
    prev_loss = jax.random.uniform(k3, (B, N), dtype=jnp.float32)

    transport_lambda = 0.5

    # --- Pallas kernel (forced): with existing loss (l1) and without (l2) ---
    out_l1 = box_distance_loss(proposal_boxes, pred_boxes, prev_loss,
                               box_distance_type="l1",
                               transport_lambda=transport_lambda,
                               use_pallas=True)
    out_l2 = box_distance_loss(proposal_boxes, pred_boxes, None,
                               box_distance_type="l2",
                               transport_lambda=transport_lambda,
                               use_pallas=True)
    # Non-multiple-of-128 box count forced through the Pallas path
    # (exercises pad + partial-last-block + slice-back logic).
    out_odd = box_distance_loss(proposal_boxes[:, :1000], pred_boxes[:, :1000],
                                prev_loss[:, :1000],
                                box_distance_type="l1",
                                transport_lambda=transport_lambda,
                                use_pallas=True)
    # Tiny case, single (partial-width) tile, still forced through Pallas.
    out_small = box_distance_loss(proposal_boxes[:, :9], pred_boxes[:, :9],
                                  prev_loss[:, :9],
                                  box_distance_type="l1",
                                  transport_lambda=transport_lambda,
                                  use_pallas=True)
    # Default heuristic path (fused XLA) for the same small size.
    out_xla = box_distance_loss(proposal_boxes, pred_boxes, prev_loss,
                                box_distance_type="l1",
                                transport_lambda=transport_lambda)
    jax.block_until_ready((out_l1, out_l2, out_odd, out_small, out_xla))

    # --- reference (plain JAX) ---
    diff = proposal_boxes - pred_boxes
    ref_l1 = prev_loss + jnp.abs(diff).sum(-1) * transport_lambda
    ref_l2 = jnp.square(diff).sum(-1) * transport_lambda

    assert bool(jnp.isfinite(out_l1).all())
    assert bool(jnp.isfinite(out_l2).all())
    assert bool(jnp.isfinite(out_odd).all())
    assert bool(jnp.isfinite(out_small).all())
    assert jnp.allclose(out_l1, ref_l1, rtol=1e-5, atol=1e-5)
    assert jnp.allclose(out_l2, ref_l2, rtol=1e-5, atol=1e-3)
    assert jnp.allclose(out_odd, ref_l1[:, :1000], rtol=1e-5, atol=1e-5)
    assert jnp.allclose(out_small, ref_l1[:, :9], rtol=1e-5, atol=1e-5)
    assert jnp.allclose(out_xla, ref_l1, rtol=1e-5, atol=1e-5)

    # TODO(synk): the PyTorch module mutates python dicts (loss_dict) in-place
    # and asserts per-image finiteness inside forward; here the updated
    # transport_loss is returned as an array and checked host-side.
    print("KERNEL_OK")
</pallas_src>

<mosaic_0001>
module attributes {stable_mosaic.version = 11 : i64} {
  func.func @_box_distance_kernel(%arg0: i32, %arg1: memref<8x512xf32, #tpu.memory_space<vmem>>, %arg2: memref<8x512xf32, #tpu.memory_space<vmem>>, %arg3: memref<512x128xf32, #tpu.memory_space<vmem>>, %arg4: memref<8x128xf32, #tpu.memory_space<vmem>>, %arg5: memref<8x128xf32, #tpu.memory_space<vmem>>) attributes {dimension_semantics = [#tpu.dimension_semantics<parallel>], iteration_bounds = array<i64: 2>, scalar_prefetch = 0 : i64, scratch_operands = 0 : i64, tpu.core_type = #tpu.core_type<tc>, window_params = [{transform_indices = @transform_0, window_bounds = array<i64: 8, 512>}, {transform_indices = @transform_1, window_bounds = array<i64: 8, 512>}, {pipeline_mode = #tpu.pipeline_mode<synchronous>, transform_indices = @transform_2, window_bounds = array<i64: 512, 128>}, {transform_indices = @transform_3, window_bounds = array<i64: 8, 128>}, {transform_indices = @transform_4, window_bounds = array<i64: 8, 128>}]} {
    %c0 = arith.constant 0 : index
    %c0_0 = arith.constant 0 : index
    %0 = vector.load %arg1[%c0, %c0_0] : memref<8x512xf32, #tpu.memory_space<vmem>>, vector<8x512xf32>
    %c0_1 = arith.constant 0 : index
    %c0_2 = arith.constant 0 : index
    %1 = vector.load %arg2[%c0_1, %c0_2] : memref<8x512xf32, #tpu.memory_space<vmem>>, vector<8x512xf32>
    %2 = arith.subf %0, %1 : vector<8x512xf32>
    %3 = math.absf %2 : vector<8x512xf32>
    %c0_3 = arith.constant 0 : index
    %c0_4 = arith.constant 0 : index
    %4 = vector.load %arg3[%c0_3, %c0_4] : memref<512x128xf32, #tpu.memory_space<vmem>>, vector<512x128xf32>
    %cst = arith.constant dense<0.000000e+00> : vector<8x128xf32>
    %5 = tpu.matmul %3, %4, %cst {dimension_numbers = #tpu.dot_dimension_numbers<[1], [0], [0], [1], [0, 0, 1, 1], [], []>} : vector<8x512xf32>, vector<512x128xf32>, vector<8x128xf32> -> vector<8x128xf32>
    %cst_5 = arith.constant 5.000000e-01 : f32
    %6 = vector.broadcast %cst_5 : f32 to vector<8x128xf32>
    %7 = arith.mulf %5, %6 : vector<8x128xf32>
    %c0_6 = arith.constant 0 : index
    %c0_7 = arith.constant 0 : index
    %8 = vector.load %arg4[%c0_6, %c0_7] : memref<8x128xf32, #tpu.memory_space<vmem>>, vector<8x128xf32>
    %9 = arith.addf %7, %8 : vector<8x128xf32>
    %c0_8 = arith.constant 0 : index
    %c0_9 = arith.constant 0 : index
    %10 = vector.load %arg5[%c0_8, %c0_9] : memref<8x128xf32, #tpu.memory_space<vmem>>, vector<8x128xf32>
    tpu.vector_store %arg5[%c0_8, %c0_9], %9 {strides = array<i32>} : memref<8x128xf32, #tpu.memory_space<vmem>>, vector<8x128xf32>,
    return
  }
  func.func @transform_0(%arg0: i32) -> (i32, i32) {
    %c0_i32 = arith.constant 0 : i32
    %c0_i32_0 = arith.constant 0 : i32
    return %arg0, %c0_i32 : i32, i32
  }
  func.func @transform_1(%arg0: i32) -> (i32, i32) {
    %c0_i32 = arith.constant 0 : i32
    %c0_i32_0 = arith.constant 0 : i32
    return %arg0, %c0_i32 : i32, i32
  }
  func.func @transform_2(%arg0: i32) -> (i32, i32) {
    %c0_i32 = arith.constant 0 : i32
    %c0_i32_0 = arith.constant 0 : i32
    %c0_i32_1 = arith.constant 0 : i32
    return %c0_i32, %c0_i32_0 : i32, i32
  }
  func.func @transform_3(%arg0: i32) -> (i32, i32) {
    %c0_i32 = arith.constant 0 : i32
    %c0_i32_0 = arith.constant 0 : i32
    return %arg0, %c0_i32 : i32, i32
  }
  func.func @transform_4(%arg0: i32) -> (i32, i32) {
    %c0_i32 = arith.constant 0 : i32
    %c0_i32_0 = arith.constant 0 : i32
    return %arg0, %c0_i32 : i32, i32
  }
}

</mosaic_0001>

<bundles_post_ra>
// kernel: tpu_custom_call.1
= control target key start
LH: loop header
LB: loop body
LE: loop exit
PB: predicated region body
PF: predicated region fallthrough
CT: control target
= control target key end

     0   :  { %s1407_s0 = inlined_call_operand.hbm [shape: f32[16,512], index: 0, kind: input, shape index: {}]   ;;  %s1408_s1 = inlined_call_operand.hbm [shape: f32[16,512], index: 1, kind: input, shape index: {}]   ;;  %s1409_s2 = inlined_call_operand.hbm [shape: f32[512,128], index: 2, kind: input, shape index: {}]   ;;  %s1410_s3 = inlined_call_operand.hbm [shape: f32[16,128], index: 3, kind: input, shape index: {}]   ;;  %s1411_s4 = inlined_call_operand.hbm [shape: f32[16,128], index: 4, kind: output, shape index: {}]  }
   0x1   :  { %1419 = sst [smem:[#allocation17_spill]] %s1407_s0 }
   0x2   :  { %1420 = sst [smem:[#allocation18_spill]] %s1409_s2 }
   0x3   :  { %9 = vsyncpa [#allocation3], 0 }
   0x4   :  { %11 = vsyncpa [#allocation3 + $0x1], 0 }
   0x5   :  { %12 = vsyncpa [#allocation6], 0 }
   0x6   :  { %14 = vsyncpa [#allocation6 + $0x1], 0 }
   0x7   :  { %15 = vsyncpa [#allocation9], 0 }
   0x8   :  { %17 = vsyncpa [#allocation9 + $0x1], 0 }
   0x9   :  { %18 = vsyncpa [#allocation4], 0 }
   0xa   :  { %20 = vsyncpa [#allocation4 + $0x1], 0  ;;  %s1123_s15 = smov 0   ;;  %s1125_s16 = smov 0  }
   0xb   :  { %s1127_s17 = smov 0   ;;  %s1129_s18 = smov 0  }
   0xc LB: > { %s1144_s19 = sadd.s32 4294967295, %s1089_s18   ;;  %s666_s20 = sadd.s32 4294967294, %s1089_s18   ;;  %s1089_s18 = sphi %s1129_s18, %s1446_s18   ;;  %s1085_s17 = sphi %s1127_s17, %s1445_s17   ;;  %s1081_s16 = sphi %s1125_s16, %s1444_s16   ;;  %s1077_s15 = sphi %s1123_s15, %s1443_s15  }
   0xd   : > { %p46_p0 = scmp.ne.s32.totalorder %s1081_s16, %s1077_s15  ;;  %p1412_p1 = scmp.eq.s32.totalorder %s1144_s19, 0 }
   0xe   : > { %p149_p3 = scmp.eq.s32.totalorder %s666_s20, 1  ;;  %p667_p5 = scmp.ge.s32.totalorder %s1089_s18, 1 }
   0xf   : > { %p1153_p4 = por %p1412_p1, %p46_p0  ;;  %p156_p7 = scmp.lt.s32.totalorder %s1089_s18, 3 }
  0x10   : > { %p1158_p6 = por %p149_p3, %p46_p0  ;;  %s1091_s24 = smov [#allocation7]  }
  0x11   : > { %s1421_s21 = scalar_select %p1153_p4, 1, 0 }
  0x12   : > { %s1422_s22 = scalar_select %p1158_p6, 1, 0 }
  0x13   : > { %p1163_p8 = pnand %p667_p5, %p156_p7  ;;  %s168_s25 = sshll.u32 %s1091_s24, 4  ;;  %s1167_s25 = int_to_ptr.vmem [resolvable:$true] %s168_s25 }
  0x14   : > { %s1179_s27 = sadd.s32 1, %s1089_s18   ;;  %s33_s28 = sadd.s32 1, %s1085_s17 }
  0x15   : > { %s1423_s23 = scalar_select %p1163_p8, 1, 0 }
  0x16   : > { %p836_p9 = pneg %p1163_p8  ;;  %s30_s29 = ssub.s32 %s1089_s18, %s1179_s27 }
  0x17   : > { %s1425_s2 = sld [smem:[#allocation18_spill]] }
  0x18   : > { %p1174_p11 = pnand %p836_p9, %p1412_p1 }
  0x1a   : > { %p895_p13 = pneg %p1174_p11 }
  0x1d   : > { %s893_s6 = scalar_lea.hbm %s1425_s2, 8192 }
  0x1e   : > { %p894_p12 = scmp.ne.s32.totalorder %s1425_s2, %s893_s6  ;;  %p900_p5 = scmp.lt.u32.totalorder %s893_s6, %s1425_s2 }
  0x20   : > { %p896_p0 = pnand %p895_p13, %p894_p12 }
  0x22   : > { %p897_p3 = pneg %p896_p0 }
  0x24   : > { %p902_p7 = pnand %p900_p5, %p897_p3 }
  0x26   : > { %905 = shalt.err (!%p902_p7)
}
  0x27   : > { %s906_s11 = scalar_lea.vmem %s1167_s25, 8192  ;;  %p914_p2 = scmp.lt.s32.totalorder %s1167_s25, %s1167_s25 }
  0x28   : > { %p907_p9 = scmp.ne.s32.totalorder %s1167_s25, %s906_s11  ;;  %p915_p6 = scmp.lt.s32.totalorder %s906_s11, %s906_s11 }
  0x2a   : > { %p909_p10 = pnand %p907_p9, %p895_p13  ;;  %p916_p4 = por %p915_p6, %p914_p2 }
  0x2c   : > { %p910_p1 = pneg %p909_p10 }
  0x2e   : > { %p917_p8 = pnand %p916_p4, %p910_p1 }
  0x30   : > { %920 = shalt.err (!%p917_p8)
}
  0x31   : > { %s1092_s12 = smov 128   ;;  %s1093_s13 = smov 8  }
  0x32   : > { %839 = dma.hbm_to_vmem [thread:$0]  (!%p1174_p11), %s1425_s2, 8192, %s1167_s25, [#allocation6], %s1092_s12, %s1092_s12, %s1093_s13  }
  0x33   : > { %p31_p2 = scmp.eq.s32.totalorder %s30_s29, 0  ;;  %p40_p1 = scmp.ne.s32.totalorder %s1085_s17, %s1081_s16 }
  0x34   : > { %p41_p4 = scmp.eq.s32.totalorder %s1089_s18, 0  ;;  %p855_p6 = scmp.lt.s32.totalorder %s1089_s18, 2 }
  0x35   : > { %s1210_s24 = scalar_select %p31_p2, %s1085_s17, %s33_s28  }
  0x36   : > { %p42_p8 = por %p41_p4, %p40_p1  ;;  %p1427_p10 = scmp.eq.s32.totalorder %s1144_s19, 1 }
  0x37   : > { %1426 = sst [smem:[#allocation16_spill]] %s1210_s24  ;;  %s1219_s5 = sand.u32 1, %s1085_s17  }
  0x38   : > { %p1214_p12 = por %p1427_p10, %p40_p1  ;;  %s688_s26 = sshll.u32 %s1089_s18, 9 }
  0x39   : > { %s1415_s6 = sshll.u32 %s1219_s5, 5  ;;  %s1429_s0 = sld [smem:[#allocation17_spill]] }
  0x3a   : > { %s1428_s30 = scalar_select %p1214_p12, 1, 0 }
  0x3b   : > { %s186_s28 = scalar_lea.vmem [#allocation2], %s1415_s6  ;;  %p1230_p11 = pnand %p855_p6, %p42_p8 }
  0x3c   : > { %s194_s8 = sshll.u32 %s186_s28, 4  ;;  %s1239_s12 = scalar_lea.hbm %s1408_s1, %s688_s26  ;;  %s1234_s8 = int_to_ptr.vmem [resolvable:$true] %s194_s8 }
  0x3d   : > { %s1430_s9 = scalar_select %p1230_p11, 1, 0 }
  0x3e   : > { %s183_s13 = scalar_lea.sflag [#allocation3], %s1219_s5  ;;  %p1246_p0 = pneg %p1230_p11 }
  0x3f   : > { %s1226_s7 = scalar_lea.hbm %s1429_s0, %s688_s26  ;;  %s926_s28 = scalar_lea.hbm %s1429_s0, 1024 }
  0x40   : > { %s921_s14 = scalar_lea.hbm %s1226_s7, 512  ;;  %p927_p7 = scmp.lt.u32.totalorder %s1226_s7, %s1429_s0 }
  0x41   : > { %p922_p13 = scmp.ne.s32.totalorder %s1226_s7, %s921_s14  ;;  %p928_p9 = scmp.lt.u32.totalorder %s926_s28, %s921_s14 }
  0x42   : > { %p930_p1 = scmp.lt.u32.totalorder %s921_s14, %s1226_s7 }
  0x43   : > { %p924_p3 = pnand %p1246_p0, %p922_p13  ;;  %p929_p2 = por %p928_p9, %p927_p7 }
  0x45   : > { %p925_p5 = pneg %p924_p3  ;;  %p931_p4 = por %p930_p1, %p929_p2 }
  0x47   : > { %p932_p6 = pnand %p931_p4, %p925_p5 }
  0x49   : > { %935 = shalt.err (!%p932_p6)
}
  0x4a   : > { %s936_s26 = scalar_lea.vmem %s1234_s8, 512  ;;  %s1094_s11 = smov [#allocation2]  }
  0x4b   : > { %p937_p8 = scmp.ne.s32.totalorder %s1234_s8, %s936_s26  ;;  %s941_s25 = sshll.u32 %s1094_s11, 4  ;;  %s942_s25 = int_to_ptr.vmem [resolvable:$false] %s941_s25 }
  0x4c   : > { %s943_s6 = scalar_lea.vmem %s942_s25, 1024  ;;  %p944_p3 = scmp.lt.s32.totalorder %s1234_s8, %s942_s25 }
  0x4d   : > { %p939_p10 = pnand %p937_p8, %p1246_p0  ;;  %p945_p12 = scmp.lt.s32.totalorder %s943_s6, %s936_s26 }
  0x4f   : > { %p940_p13 = pneg %p939_p10  ;;  %p946_p7 = por %p945_p12, %p944_p3 }
  0x51   : > { %p947_p9 = pnand %p946_p7, %p940_p13 }
  0x53   : > { %950 = shalt.err (!%p947_p9)
}
  0x54   : > { %843 = dma.hbm_to_vmem [thread:$0]  (!%p1230_p11), %s1226_s7, 512, %s1234_s8, %s183_s13  }
  0x55   : > { %s201_s14 = sand.u32 1, %s1089_s18   ;;  %s1432_s29 = sshll.u32 %s1219_s5, 5 }
  0x56   : > { %s205_s28 = scalar_lea.vmem [#allocation5], %s1432_s29  ;;  %s202_s26 = scalar_lea.sflag [#allocation6], %s201_s14 }
  0x57   : > { %s213_s10 = sshll.u32 %s205_s28, 4  ;;  %s951_s11 = scalar_lea.hbm %s1239_s12, 512  ;;  %s214_s10 = int_to_ptr.vmem [resolvable:$true] %s213_s10 }
  0x58   : > { %p952_p12 = scmp.ne.s32.totalorder %s1239_s12, %s951_s11  ;;  %s956_s0 = scalar_lea.hbm %s1408_s1, 1024 }
  0x59   : > { %p957_p1 = scmp.lt.u32.totalorder %s1239_s12, %s1408_s1  ;;  %p958_p4 = scmp.lt.u32.totalorder %s956_s0, %s951_s11 }
  0x5a   : > { %p954_p5 = pnand %p952_p12, %p1246_p0  ;;  %p960_p8 = scmp.lt.u32.totalorder %s951_s11, %s1239_s12 }
  0x5b   : > { %p959_p6 = por %p958_p4, %p957_p1 }
  0x5c   : > { %p955_p2 = pneg %p954_p5 }
  0x5d   : > { %p961_p10 = por %p960_p8, %p959_p6 }
  0x5f   : > { %p962_p13 = pnand %p961_p10, %p955_p2 }
  0x61   : > { %965 = shalt.err (!%p962_p13)
}
  0x62   : > { %s966_s7 = scalar_lea.vmem %s214_s10, 512  ;;  %s1095_s8 = smov [#allocation5]  }
  0x63   : > { %p967_p3 = scmp.ne.s32.totalorder %s214_s10, %s966_s7  ;;  %s971_s13 = sshll.u32 %s1095_s8, 4  ;;  %s972_s13 = int_to_ptr.vmem [resolvable:$false] %s971_s13 }
  0x64   : > { %s973_s14 = scalar_lea.vmem %s972_s13, 1024  ;;  %p974_p12 = scmp.lt.s32.totalorder %s214_s10, %s972_s13 }
  0x65   : > { %p969_p7 = pnand %p967_p3, %p1246_p0  ;;  %p975_p5 = scmp.lt.s32.totalorder %s973_s14, %s966_s7 }
  0x67   : > { %p970_p9 = pneg %p969_p7  ;;  %p976_p11 = por %p975_p5, %p974_p12 }
  0x69   : > { %p977_p1 = pnand %p976_p11, %p970_p9 }
  0x6b   : > { %980 = shalt.err (!%p977_p1)
}
  0x6c   : > { %p1433_p4 = scmp.ne.s32.totalorder %s1430_s9, 0  ;;  %s676_s0 = sshll.u32 %s1219_s5, 3 }
  0x6d   : > { %s677_s2 = sshll.u32 %s1089_s18, 7  ;;  %s224_s11 = scalar_lea.vmem [#allocation8], %s676_s0 }
  0x6e   : > { %846 = dma.hbm_to_vmem [thread:$0]  (!%p1433_p4), %s1239_s12, 512, %s214_s10, %s202_s26  }
  0x6f   : > { %s1294_s28 = scalar_lea.hbm %s1410_s3, %s677_s2  ;;  %s231_s25 = sshll.u32 %s224_s11, 4  ;;  %s232_s25 = int_to_ptr.vmem [resolvable:$true] %s231_s25 }
  0x70   : > { %s221_s6 = scalar_lea.sflag [#allocation9], %s1219_s5  ;;  %s981_s7 = scalar_lea.hbm %s1294_s28, 128 }
  0x71   : > { %p982_p11 = scmp.ne.s32.totalorder %s1294_s28, %s981_s7  ;;  %s986_s26 = scalar_lea.hbm %s1410_s3, 256 }
  0x72   : > { %p987_p8 = scmp.lt.u32.totalorder %s1294_s28, %s1410_s3  ;;  %p988_p10 = scmp.lt.u32.totalorder %s986_s26, %s981_s7 }
  0x73   : > { %p984_p2 = pnand %p982_p11, %p1246_p0  ;;  %p990_p3 = scmp.lt.u32.totalorder %s981_s7, %s1294_s28 }
  0x74   : > { %p989_p13 = por %p988_p10, %p987_p8 }
  0x75   : > { %p985_p6 = pneg %p984_p2 }
  0x76   : > { %p991_p7 = por %p990_p3, %p989_p13 }
  0x78   : > { %p992_p9 = pnand %p991_p7, %p985_p6 }
  0x7a   : > { %995 = shalt.err (!%p992_p9)
}
  0x7b   : > { %s996_s5 = scalar_lea.vmem %s232_s25, 128  ;;  %s1096_s14 = smov [#allocation8]  }
  0x7c   : > { %p997_p12 = scmp.ne.s32.totalorder %s232_s25, %s996_s5  ;;  %s1001_s0 = sshll.u32 %s1096_s14, 4  ;;  %s1002_s0 = int_to_ptr.vmem [resolvable:$false] %s1001_s0 }
  0x7d   : > { %s1003_s2 = scalar_lea.vmem %s1002_s0, 256  ;;  %p1004_p11 = scmp.lt.s32.totalorder %s232_s25, %s1002_s0 }
  0x7e   : > { %p999_p5 = pnand %p997_p12, %p1246_p0  ;;  %p1005_p2 = scmp.lt.s32.totalorder %s1003_s2, %s996_s5 }
  0x80   : > { %p1000_p1 = pneg %p999_p5  ;;  %p1006_p4 = por %p1005_p2, %p1004_p11 }
  0x82   : > { %p1007_p8 = pnand %p1006_p4, %p1000_p1 }
  0x84   : > { %1010 = shalt.err (!%p1007_p8)
}
  0x85   : > { %p1434_p10 = scmp.ne.s32.totalorder %s1430_s9, 0  ;;  %p1435_p6 = scmp.ne.s32.totalorder %s1423_s23, 0 }
  0x86   : > { %s1317_s20 = sand.u32 (!%p1435_p6), 1, %s1081_s16   ;;  %p1436_p0 = scmp.ne.s32.totalorder (!%p1435_p6), %s1421_s21, 0 }
  0x87   : > { %849 = dma.hbm_to_vmem [thread:$0]  (!%p1434_p10), %s1294_s28, 128, %s232_s25, %s221_s6  }
  0x88   : > { %240 = sbr.rel (%p1435_p6) target bundleno = 425 (0x1a9), region = 36  ;;  %s679_s24 = sshll.u32 (!%p1435_p6), %s1317_s20, 5 }
  0x89   : > { %s243_s29 = scalar_lea.sflag (!%p1435_p6), [#allocation3], %s1317_s20  ;;  %s1321_s11 = scalar_lea.vmem (!%p1435_p6), [#allocation2], %s679_s24 }
  0x8f   : > { %1056 = dma.done.wait (%p1436_p0), %s243_s29, 512  }
  0x90   : > { %1058 = vsyncadd (%p1436_p0), %s243_s29, 4294966784  ;;  %s251_s9 = sand.u32 1, %s1144_s19   ;;  %s1328_s28 = scalar_lea.vmem [#allocation5], %s679_s24 }
  0x91   : > { %s252_s23 = scalar_lea.sflag [#allocation6], %s251_s9 }
  0x92   : > { %1060 = dma.done.wait (%p1436_p0), %s252_s23, 512  }
  0x93   : > { %1062 = vsyncadd (%p1436_p0), %s252_s23, 4294966784  ;;  %p1437_p4 = scmp.eq.s32.totalorder %s1144_s19, 0 }
  0x95   : > { %1064 = dma.done.wait (%p1437_p4), [#allocation6], 8192   ;;  %p1438_p13 = pmov %p1437_p4 }
  0x96   : > { %s682_s25 = sshll.u32 %s1317_s20, 3  ;;  %s265_s6 = scalar_lea.sflag [#allocation9], %s1317_s20 }
  0x97   : > { %1066 = vsyncadd (%p1438_p13), [#allocation6], 4294959104  ;;  %s1342_s7 = scalar_lea.vmem [#allocation8], %s682_s25 }
  0x98   : > { %1068 = dma.done.wait (%p1436_p0), %s265_s6, 128  }
  0x99   : > { %1070 = vsyncadd (%p1436_p0), %s265_s6, 4294967168  ;;  %v335_v0 = vld [vmem:[#allocation7 + $0x80] sm:$0xff]  ;;  %v336_v1 = vld [vmem:[#allocation7 + $0x88] sm:$0xff]  ;;  %s685_s21 = sshll.u32 %s1144_s19, 7  ;;  %s302_s12 = scalar_lea.vmem [#allocation10], %s682_s25 }
  0x9a   : > { %v367_v2 = vld [vmem:[#allocation7 + $0x180] sm:$0xff]  ;;  %v760_v3 = vpack.c.bf16 %v336_v1, %v335_v0  ;;  %v368_v4 = vld [vmem:[#allocation7 + $0x188] sm:$0xff]  ;;  %v337_v11 = vld [vmem:[#allocation7 + $0x90] sm:$0xff]  ;;  %s541_s10 = sshll.u32 %s302_s12, 4  ;;  %s1363_s13 = scalar_lea.hbm %s1411_s4, %s685_s21  ;;  %s1365_s10 = int_to_ptr.vmem [resolvable:$true] %s541_s10 }
  0x9b   : > { %v319_v5 = vld [vmem:[#allocation7] sm:$0xff]  ;;  %v320_v6 = vld [vmem:[#allocation7 + $0x8] sm:$0xff]  ;;  %v792_v7 = vpack.c.bf16 %v368_v4, %v367_v2  ;;  %v338_v13 = vld [vmem:[#allocation7 + $0x98] sm:$0xff]  ;;  %s528_s5 = scalar_lea.sflag [#allocation4], %s1317_s20  ;;  %s1011_s14 = scalar_lea.vmem %s1365_s10, 128 }
  0x9c   : > { %v762_v8 = vpack.c.bf16 %v320_v6, %v319_v5  ;;  %v351_v9 = vld [vmem:[#allocation7 + $0x100] sm:$0xff]  ;;  %v352_v10 = vld [vmem:[#allocation7 + $0x108] sm:$0xff]  ;;  %761 = vmatprep.subr.bf16.mxu0 %v760_v3  ;;  %v369_v14 = vld [vmem:[#allocation7 + $0x190] sm:$0xff]  ;;  %v764_v16 = vpack.c.bf16 %v338_v13, %v337_v11  ;;  %p1012_p3 = scmp.ne.s32.totalorder %s1365_s10, %s1011_s14  ;;  %p1439_p7 = scmp.ne.s32.totalorder %s1428_s30, 0 }
  0x9d   : > { %v794_v12 = vpack.c.bf16 %v352_v10, %v351_v9  ;;  %v370_v15 = vld [vmem:[#allocation7 + $0x198] sm:$0xff]  ;;  %793 = vmatprep.subr.bf16.mxu1 %v792_v7  ;;  %v321_v18 = vld [vmem:[#allocation7 + $0x10] sm:$0xff]  ;;  %v339_v23 = vld [vmem:[#allocation7 + $0xa0] sm:$0xff]  ;;  %s1097_s19 = smov [#allocation10]  }
  0x9e   : > { %763 = vmatpush3.bf16.msra.mxu0 %v762_v8  ;;  %v796_v17 = vpack.c.bf16 %v370_v15, %v369_v14  ;;  %v322_v19 = vld [vmem:[#allocation7 + $0x18] sm:$0xff]  ;;  %v353_v20 = vld [vmem:[#allocation7 + $0x110] sm:$0xff]  ;;  %v340_v24 = vld [vmem:[#allocation7 + $0xa8] sm:$0xff]  ;;  %p1013_p9 = pnand %p1012_p3, %p1439_p7  ;;  %s1015_s0 = sshll.u32 %s1097_s19, 4  ;;  %s1016_s0 = int_to_ptr.vmem [resolvable:$false] %s1015_s0 }
  0x9f   : > { %795 = vmatpush3.bf16.msra.mxu1 %v794_v12  ;;  %v766_v21 = vpack.c.bf16 %v322_v19, %v321_v18  ;;  %v354_v22 = vld [vmem:[#allocation7 + $0x118] sm:$0xff]  ;;  %765 = vmatprep.subr.bf16.mxu0 %v764_v16  ;;  %v768_v26 = vpack.c.bf16 %v340_v24, %v339_v23  ;;  %v371_v27 = vld [vmem:[#allocation7 + $0x1a0] sm:$0xff]  ;;  %v372_v28 = vld [vmem:[#allocation7 + $0x1a8] sm:$0xff]  ;;  %s1017_s2 = scalar_lea.vmem %s1016_s0, 256  ;;  %p1018_p5 = scmp.lt.s32.totalorder %s1365_s10, %s1016_s0 }
  0xa0   : > { %797 = vmatprep.subr.bf16.mxu1 %v796_v17  ;;  %v798_v25 = vpack.c.bf16 %v354_v22, %v353_v20  ;;  %v323_v29 = vld [vmem:[#allocation7 + $0x20] sm:$0xff]  ;;  %v800_v30 = vpack.c.bf16 %v372_v28, %v371_v27  ;;  %v324_v31 = vld [vmem:[#allocation7 + $0x28] sm:$0xff]  ;;  %v341_v35 = vld [vmem:[#allocation7 + $0xb0] sm:$0xff]  ;;  %p1014_p12 = pneg %p1013_p9  ;;  %p1019_p1 = scmp.lt.s32.totalorder %s1017_s2, %s1011_s14 }
  0xa1   : > { %v355_v32 = vld [vmem:[#allocation7 + $0x120] sm:$0xff]  ;;  %v356_v33 = vld [vmem:[#allocation7 + $0x128] sm:$0xff]  ;;  %v770_v34 = vpack.c.bf16 %v324_v31, %v323_v29  ;;  %v342_v36 = vld [vmem:[#allocation7 + $0xb8] sm:$0xff] }
  0xa2   : > { %767 = vmatpush3.bf16.msra.mxu0 %v766_v21  ;;  %v373_v37 = vld [vmem:[#allocation7 + $0x1b0] sm:$0xff]  ;;  %v802_v38 = vpack.c.bf16 %v356_v33, %v355_v32  ;;  %v772_v39 = vpack.c.bf16 %v342_v36, %v341_v35  ;;  %v374_v40 = vld [vmem:[#allocation7 + $0x1b8] sm:$0xff]  ;;  %v343_v46 = vld [vmem:[#allocation7 + $0xc0] sm:$0xff]  ;;  %p1020_p11 = por %p1019_p1, %p1018_p5 }
  0xa3   : > { %799 = vmatpush3.bf16.msra.mxu1 %v798_v25  ;;  %769 = vmatprep.subr.bf16.mxu0 %v768_v26  ;;  %v325_v41 = vld [vmem:[#allocation7 + $0x30] sm:$0xff]  ;;  %v326_v42 = vld [vmem:[#allocation7 + $0x38] sm:$0xff]  ;;  %v804_v43 = vpack.c.bf16 %v374_v40, %v373_v37  ;;  %v344_v47 = vld [vmem:[#allocation7 + $0xc8] sm:$0xff] }
  0xa4   : > { %801 = vmatprep.subr.bf16.mxu1 %v800_v30  ;;  %v357_v44 = vld [vmem:[#allocation7 + $0x130] sm:$0xff]  ;;  %v358_v45 = vld [vmem:[#allocation7 + $0x138] sm:$0xff]  ;;  %v375_v48 = vld [vmem:[#allocation7 + $0x1c0] sm:$0xff]  ;;  %v774_v50 = vpack.c.bf16 %v326_v42, %v325_v41  ;;  %v776_v52 = vpack.c.bf16 %v344_v47, %v343_v46  ;;  %p1021_p2 = pnand %p1020_p11, %p1014_p12 }
  0xa5   : > { %v376_v49 = vld [vmem:[#allocation7 + $0x1c8] sm:$0xff]  ;;  %v806_v51 = vpack.c.bf16 %v358_v45, %v357_v44  ;;  %v327_v53 = vld [vmem:[#allocation7 + $0x40] sm:$0xff]  ;;  %v345_v58 = vld [vmem:[#allocation7 + $0xd0] sm:$0xff] }
  0xa6   : > { %771 = vmatpush3.bf16.msra.mxu0 %v770_v34  ;;  %v328_v54 = vld [vmem:[#allocation7 + $0x48] sm:$0xff]  ;;  %v359_v55 = vld [vmem:[#allocation7 + $0x140] sm:$0xff]  ;;  %v808_v56 = vpack.c.bf16 %v376_v49, %v375_v48  ;;  %v346_v59 = vld [vmem:[#allocation7 + $0xd8] sm:$0xff] }
  0xa7   : > { %803 = vmatpush3.bf16.msra.mxu1 %v802_v38  ;;  %773 = vmatprep.subr.bf16.mxu0 %v772_v39  ;;  %v360_v57 = vld [vmem:[#allocation7 + $0x148] sm:$0xff]  ;;  %v377_v60 = vld [vmem:[#allocation7 + $0x1d0] sm:$0xff]  ;;  %v378_v61 = vld [vmem:[#allocation7 + $0x1d8] sm:$0xff]  ;;  %v778_v62 = vpack.c.bf16 %v328_v54, %v327_v53  ;;  %v780_v0 = vpack.c.bf16 %v346_v59, %v345_v58 }
  0xa8   : > { %805 = vmatprep.subr.bf16.mxu1 %v804_v43  ;;  %v810_v63 = vpack.c.bf16 %v360_v57, %v359_v55  ;;  %v329_v1 = vld [vmem:[#allocation7 + $0x50] sm:$0xff]  ;;  %v330_v2 = vld [vmem:[#allocation7 + $0x58] sm:$0xff]  ;;  %v812_v4 = vpack.c.bf16 %v378_v61, %v377_v60  ;;  %v347_v6 = vld [vmem:[#allocation7 + $0xe0] sm:$0xff] }
  0xa9   : > { %v361_v3 = vld [vmem:[#allocation7 + $0x150] sm:$0xff]  ;;  %v362_v5 = vld [vmem:[#allocation7 + $0x158] sm:$0xff]  ;;  %v348_v7 = vld [vmem:[#allocation7 + $0xe8] sm:$0xff]  ;;  %v782_v11 = vpack.c.bf16 %v330_v2, %v329_v1 }
  0xaa   : > { %775 = vmatpush3.bf16.msra.mxu0 %v774_v50  ;;  %v379_v8 = vld [vmem:[#allocation7 + $0x1e0] sm:$0xff]  ;;  %v380_v9 = vld [vmem:[#allocation7 + $0x1e8] sm:$0xff]  ;;  %v814_v15 = vpack.c.bf16 %v362_v5, %v361_v3  ;;  %v784_v16 = vpack.c.bf16 %v348_v7, %v347_v6  ;;  %v349_v17 = vld [vmem:[#allocation7 + $0xf0] sm:$0xff] }
  0xab   : > { %807 = vmatpush3.bf16.msra.mxu1 %v806_v51  ;;  %777 = vmatprep.subr.bf16.mxu0 %v776_v52  ;;  %v331_v10 = vld [vmem:[#allocation7 + $0x60] sm:$0xff]  ;;  %v332_v12 = vld [vmem:[#allocation7 + $0x68] sm:$0xff]  ;;  %v816_v20 = vpack.c.bf16 %v380_v9, %v379_v8  ;;  %v350_v21 = vld [vmem:[#allocation7 + $0xf8] sm:$0xff] }
  0xac   : > { %809 = vmatprep.subr.bf16.mxu1 %v808_v56  ;;  %v363_v13 = vld [vmem:[#allocation7 + $0x160] sm:$0xff]  ;;  %v364_v14 = vld [vmem:[#allocation7 + $0x168] sm:$0xff]  ;;  %v306_v23 = vld [vmem:[%s1321_s11 + $0x18] sm:$0xff]  ;;  %v786_v28 = vpack.c.bf16 %v332_v12, %v331_v10  ;;  %v788_v34 = vpack.c.bf16 %v350_v21, %v349_v17 }
  0xad   : > { %v304_v18 = vld [vmem:[%s1321_s11 + $0x8] sm:$0xff]  ;;  %v310_v24 = vld [vmem:[%s1328_s28 + $0x18] sm:$0xff]  ;;  %v381_v25 = vld [vmem:[#allocation7 + $0x1f0] sm:$0xff]  ;;  %v818_v33 = vpack.c.bf16 %v364_v14, %v363_v13 }
  0xae   : > { %779 = vmatpush3.bf16.msra.mxu0 %v778_v62  ;;  %v308_v19 = vld [vmem:[%s1328_s28 + $0x8] sm:$0xff]  ;;  %v382_v26 = vld [vmem:[#allocation7 + $0x1f8] sm:$0xff]  ;;  %v314_v27 = vsub.f32 %v306_v23, %v310_v24  ;;  %v333_v29 = vld [vmem:[#allocation7 + $0x70] sm:$0xff] }
  0xaf   : > { %811 = vmatpush3.bf16.msra.mxu1 %v810_v63  ;;  %781 = vmatprep.subr.bf16.mxu0 %v780_v0  ;;  %v312_v22 = vsub.f32 %v304_v18, %v308_v19  ;;  %v303_v31 = vld [vmem:[%s1321_s11] sm:$0xff]  ;;  %v334_v35 = vld [vmem:[#allocation7 + $0x78] sm:$0xff]  ;;  %v305_v37 = vld [vmem:[%s1321_s11 + $0x10] sm:$0xff]  ;;  %v820_v39 = vpack.c.bf16 %v382_v26, %v381_v25 }
  0xb0   : > { %813 = vmatprep.subr.bf16.mxu1 %v812_v4  ;;  %v307_v32 = vld [vmem:[%s1328_s28] sm:$0xff]  ;;  %v318_v36 = vand.u32 2147483647, %v314_v27  ;;  %v309_v38 = vld [vmem:[%s1328_s28 + $0x10] sm:$0xff]  ;;  %v366_v41 = vld [vmem:[#allocation7 + $0x178] sm:$0xff]  ;;  %v790_v43 = vpack.c.bf16 %v334_v35, %v333_v29 }
  0xb1   : > { %v316_v30 = vand.u32 2147483647, %v312_v22  ;;  %v365_v40 = vld [vmem:[#allocation7 + $0x170] sm:$0xff]  ;;  %v311_v42 = vsub.f32 %v303_v31, %v307_v32  ;;  %v313_v44 = vsub.f32 %v305_v37, %v309_v38  ;;  %v524_v55 = vld [vmem:[%s1342_s7] sm:$0xff] }
  0xb2   : > { %783 = vmatpush3.bf16.msra.mxu0 %v782_v11  ;;  %517 = vmatprep.mubr.f32.mxu1 %v318_v36  ;;  %v822_v45 = vpack.c.bf16 %v366_v41, %v365_v40 }
  0xb3   : > { %815 = vmatpush3.bf16.msra.mxu1 %v814_v15  ;;  %785 = vmatprep.subr.bf16.mxu0 %v784_v16  ;;  %v315_v46 = vand.u32 2147483647, %v311_v42  ;;  %v317_v47 = vand.u32 2147483647, %v313_v44 }
  0xb4   : > { %817 = vmatprep.subr.bf16.mxu1 %v816_v20  ;;  %447 = vmatprep.mubr.f32.mxu0 %v316_v30 }
  0xb6   : > { %787 = vmatpush3.bf16.msra.mxu0 %v786_v28 }
  0xb7   : > { %819 = vmatpush3.bf16.msra.mxu1 %v818_v33  ;;  %789 = vmatprep.subr.bf16.mxu0 %v788_v34 }
  0xb8   : > { %821 = vmatprep.subr.bf16.mxu1 %v820_v39 }
  0xba   : > { %791 = vmatpush3.bf16.msra.mxu0 %v790_v43 }
  0xbb   : > { %823 = vmatpush3.bf16.msra.mxu1 %v822_v45 }
  0xbd   : > { %448 = vmatmul.mubr.f32.vlgmr.msra.gmra.mrb[0].mxu0 %v315_v46 }
  0xbe   : > { %518 = vmatmul.mubr.f32.vlgmr.msra.gmra.mrb[0].mxu1 %v317_v47 }
 0x190   : > { %v722_v48 = vpop.f32.mrb[0].mxu0 }
 0x191   : > { %v757_v49 = vpop.f32.mrb[0].mxu1  ;;  %v723_v50 = vpop.f32.mrb[1].mxu0 }
 0x192   : > { %v724_v51 = vadd.f32 %v723_v50, %v722_v48  ;;  %v758_v52 = vpop.f32.mrb[1].mxu1 }
 0x193   : > { %v759_v53 = vadd.f32 %v758_v52, %v757_v49 }
 0x195   : > { %v520_v54 = vadd.f32 %v759_v53, %v724_v51 }
 0x197   : > { %v523_v56 = vmul.f32 0.5, %v520_v54 }
 0x199   : > { %v525_v57 = vadd.f32 %v524_v55, %v523_v56 }
 0x19b   : > { %526 = vst [vmem:[%s302_s12] sm:$0xff] %v525_v57 }
 0x19c   : > { %1024 = shalt.err (!%p1021_p2)
}
 0x19d   : > { %s1025_s20 = scalar_lea.hbm %s1363_s13, 128  ;;  %s1029_s11 = scalar_lea.hbm %s1411_s4, 256 }
 0x19e   : > { %p1026_p8 = scmp.ne.s32.totalorder %s1363_s13, %s1025_s20  ;;  %p1030_p0 = scmp.lt.u32.totalorder %s1363_s13, %s1411_s4 }
 0x19f   : > { %p1031_p4 = scmp.lt.u32.totalorder %s1029_s11, %s1025_s20  ;;  %p1033_p3 = scmp.lt.u32.totalorder %s1025_s20, %s1363_s13 }
 0x1a0   : > { %p1027_p10 = pnand %p1026_p8, %p1439_p7 }
 0x1a1   : > { %p1032_p13 = por %p1031_p4, %p1030_p0 }
 0x1a2   : > { %p1028_p6 = pneg %p1027_p10 }
 0x1a3   : > { %p1034_p9 = por %p1033_p3, %p1032_p13 }
 0x1a5   : > { %p1035_p12 = pnand %p1034_p9, %p1028_p6 }
 0x1a7   : > { %1038 = shalt.err (!%p1035_p12)
}
 0x1a8   : > { %834 = dma.vmem_to_hbm [thread:$0]  (%p1439_p7), %s1365_s10, 128, %s1363_s13, %s528_s5  }
 0x1a9 PF: > { %s553_s28 = sand.u32 1, %s1077_s15   ;;  %p1440_p5 = scmp.ne.s32.totalorder %s1422_s22, 0 }
 0x1aa   : > { %p1441_p1 = scmp.ge.s32.totalorder %s1089_s18, 2  ;;  %s554_s25 = scalar_lea.sflag [#allocation4], %s553_s28 }
 0x1ac   : > { %p851_p11 = pnand %p1441_p1, %p1440_p5 }
 0x1ae   : > { %1072 = dma.done.wait (!%p851_p11), %s554_s25, 128  }
 0x1af   : > { %1074 = vsyncadd (!%p851_p11), %s554_s25, 4294967168  ;;  %s1442_s6 = sld [smem:[#allocation16_spill]]  ;;  %p23_p2 = scmp.ge.s32.totalorder %s1179_s27, 4  }
 0x1b0   : > { %s1443_s15 = smov %s1081_s16  ;;  %s1444_s16 = smov %s1085_s17 }
 0x1b1   : > { %s1446_s18 = smov %s1179_s27  ;;  %25 = sbr.rel (!%p23_p2) target bundleno = 12 (0xc), region = 111 }
 0x1b5   : > { %s1445_s17 = smov %s1442_s6 }
 0x1b8   :  { %559 = vsyncpa [#allocation3], 1 }
 0x1b9   :  { %561 = vsyncpa [#allocation3 + $0x1], 1 }
 0x1ba   :  { %562 = vsyncpa [#allocation6], 1 }
 0x1bb   :  { %564 = vsyncpa [#allocation6 + $0x1], 1 }
 0x1bc   :  { %565 = vsyncpa [#allocation9], 1 }
 0x1bd   :  { %567 = vsyncpa [#allocation9 + $0x1], 1 }
 0x1be   :  { %568 = vsyncpa [#allocation4], 1 }
 0x1bf   :  { %570 = vsyncpa [#allocation4 + $0x1], 1 }

</bundles_post_ra>
